<compile_context>
chip_gen: v6e
topology: v6e:2x2x1
jax: 0.10.0
libtpu: 0.0.40
codegen_flags: <defaults>
</compile_context>

<pallas_src>
import functools

import jax
import jax.numpy as jnp
from jax.experimental import pallas as pl
from jax.experimental.pallas import tpu as pltpu

BETA = 0.5


def _experiment_loss_kernel(logits_ref, probs_ref, labels_ref, out_ref, acc_ref,
                            *, n_rows):
    """One (TILE_N, C) row-tile; accumulates the un-normalized loss terms."""
    p = pl.program_id(0)            # partial index ("parallel"; megacore split on v7x)
    t = pl.program_id(1)            # reduction step ("arbitrary")
    num_t = pl.num_programs(1)

    tile_n, C = logits_ref.shape

    @pl.when(t == 0)
    def _init():
        acc_ref[...] = jnp.zeros_like(acc_ref)

    logits = logits_ref[...].astype(jnp.float32)   # (tile_n, C)
    probs = probs_ref[...].astype(jnp.float32)     # (tile_n, C)
    labels = labels_ref[...]                       # (tile_n, 1) int32

    # one-hot via lane-iota compare (replaces torch scatter_)
    lane = jax.lax.broadcasted_iota(jnp.int32, (tile_n, C), 1)
    one_hot = (lane == labels).astype(jnp.float32)

    # numerically stable log-sum-exp for the cross-entropy term
    m = jnp.max(logits, axis=1, keepdims=True)
    lse = m + jnp.log(jnp.sum(jnp.exp(logits - m), axis=1, keepdims=True))

    # Fused per-row term (single cross-lane reduce):
    #   ce_row = lse - sum(one_hot * logits)
    #   qc_row = -sum(((1-beta)*one_hot + beta*probs) * log(probs))
    log_probs = jnp.log(probs)
    mix = (1.0 - BETA) * one_hot + BETA * probs
    fused = jnp.sum(-(one_hot * logits) - mix * log_probs, axis=1, keepdims=True)
    per_row = lse + fused                                         # (tile_n, 1)

    # mask rows past the real batch (ragged last tile / clamped extra tiles)
    tid = p * num_t + t
    row = tid * tile_n + jax.lax.broadcasted_iota(jnp.int32, (tile_n, 1), 0)
    per_row = jnp.where(row < n_rows, per_row, 0.0)

    # cheap elementwise accumulate; cross-sublane reduce deferred to finalize
    acc_ref[...] += per_row

    @pl.when(t == num_t - 1)
    def _finalize():
        partial = jnp.sum(acc_ref[...])
        # lane-dense (8, 128) output tile; wrapper reads element [0, 0] per partial
        out_ref[...] = jnp.full(out_ref.shape, partial, dtype=out_ref.dtype)


def experiment_loss(y_label, y_, level, *, tile_n=None, num_partials=2):
    """loss = CrossEntropy(y_label, level) + l_qc(y_, level)  (ExperimentLoss.forward).

    y_label: (N, C) logits; y_: (N, C) probabilities; level: (N,) int class ids.
    """
    N, C = y_label.shape
    labels = level.reshape(N, 1).astype(jnp.int32)

    itemsize_a = jnp.dtype(y_label.dtype).itemsize
    itemsize_b = jnp.dtype(y_.dtype).itemsize
    sub_mult = 8 if min(itemsize_a, itemsize_b) >= 4 else 16   # bf16 packs 16 sublanes

    if tile_n is None:
        # ~8 MiB per input buffer -> ~32 MiB with 2 inputs x double-buffering
        tile_n = max(sub_mult, (8 * 1024 * 1024) // max(1, C * max(itemsize_a, itemsize_b)))
    tile_n = min(int(tile_n), N)
    if tile_n < N:
        tile_n = max(sub_mult, (tile_n // sub_mult) * sub_mult)

    num_tiles = -(-N // tile_n)
    P = num_partials if num_tiles >= num_partials else 1       # v7x: 2 TensorCores
    T = -(-num_tiles // P)
    last_tile = num_tiles - 1

    def in_map(p, t):
        # clamp tiles past the real tile count; those rows are masked in-kernel
        return (jnp.minimum(p * T + t, last_tile), 0)

    block_bytes = tile_n * C * (itemsize_a + itemsize_b) + tile_n * 4
    vmem_limit = int(min(48 * 2**20, max(16 * 2**20, 4 * block_bytes)))

    out = pl.pallas_call(
        functools.partial(_experiment_loss_kernel, n_rows=N),
        out_shape=jax.ShapeDtypeStruct((P * 8, 128), jnp.float32),
        grid_spec=pltpu.PrefetchScalarGridSpec(
            num_scalar_prefetch=0,
            grid=(P, T),
            in_specs=[
                pl.BlockSpec((tile_n, C), in_map),   # y_label (native dtype)
                pl.BlockSpec((tile_n, C), in_map),   # y_      (native dtype)
                pl.BlockSpec((tile_n, 1), in_map),   # labels  (int32)
            ],
            out_specs=pl.BlockSpec((8, 128), lambda p, t: (p, 0)),
            scratch_shapes=[pltpu.VMEM((tile_n, 1), jnp.float32)],
        ),
        compiler_params=pltpu.CompilerParams(
            dimension_semantics=("parallel", "arbitrary"),
            vmem_limit_bytes=vmem_limit,
        ),
    )(y_label, y_, labels)

    partials = out[::8, 0]                     # one partial per parallel slice
    return jnp.sum(partials) * (1.0 / N)


def experiment_loss_ref(y_label, y_, level):
    """Pure-JAX reference for verification."""
    N, C = y_label.shape
    one_hot = jax.nn.one_hot(level, C, dtype=jnp.float32)
    log_sm = jax.nn.log_softmax(y_label.astype(jnp.float32), axis=1)
    l_nna = -jnp.mean(jnp.sum(one_hot * log_sm, axis=1))
    y32 = y_.astype(jnp.float32)
    l_qc = (-1.0 / N) * jnp.sum(((1 - BETA) * one_hot + BETA * y32) * jnp.log(y32))
    return l_qc + l_nna


if __name__ == "__main__":
    key = jax.random.PRNGKey(0)
    k1, k2, k3 = jax.random.split(key, 3)

    N, C = 20, 32  # batch=20, num classes=32
    y_label = jax.random.normal(k1, (N, C), dtype=jnp.float32)                       # logits
    y_ = jax.nn.softmax(jax.random.normal(k2, (N, C), dtype=jnp.float32), axis=1)    # probabilities
    level = jax.random.randint(k3, (N,), 0, C, dtype=jnp.int32)                      # target['level']

    # Default path: single (N, C) tile (fits comfortably).
    loss_single = experiment_loss(y_label, y_, level)
    # Forced small tile: exercises grid accumulation, parallel partials,
    # clamped index_map and ragged-row masking (20 rows, tile=8 -> 3 tiles).
    loss_tiled = experiment_loss(y_label, y_, level, tile_n=8)
    jax.block_until_ready((loss_single, loss_tiled))

    ref = experiment_loss_ref(y_label, y_, level)
    assert jnp.allclose(loss_single, ref, rtol=1e-5, atol=1e-5), (loss_single, ref)
    assert jnp.allclose(loss_tiled, ref, rtol=1e-5, atol=1e-5), (loss_tiled, ref)

    print("KERNEL_OK")
</pallas_src>

<mosaic_0001>
module attributes {stable_mosaic.version = 11 : i64} {
  func.func @_experiment_loss_kernel(%arg0: i32, %arg1: i32, %arg2: memref<20x32xf32, #tpu.memory_space<vmem>>, %arg3: memref<20x32xf32, #tpu.memory_space<vmem>>, %arg4: memref<20x1xi32, #tpu.memory_space<vmem>>, %arg5: memref<8x128xf32, #tpu.memory_space<vmem>>, %arg6: memref<20x1xf32, #tpu.memory_space<vmem>>) attributes {dimension_semantics = [#tpu.dimension_semantics<parallel>, #tpu.dimension_semantics<arbitrary>], iteration_bounds = array<i64: 1, 1>, scalar_prefetch = 0 : i64, scratch_operands = 1 : i64, tpu.core_type = #tpu.core_type<tc>, window_params = [{transform_indices = @transform_0, window_bounds = array<i64: 20, 32>}, {transform_indices = @transform_1, window_bounds = array<i64: 20, 32>}, {transform_indices = @transform_2, window_bounds = array<i64: 20, 1>}, {transform_indices = @transform_3, window_bounds = array<i64: 8, 128>}]} {
    %c0_i32 = arith.constant 0 : i32
    %0 = arith.cmpi eq, %arg1, %c0_i32 : i32
    %1 = arith.extui %0 : i1 to i32
    %c0_i32_0 = arith.constant 0 : i32
    %2 = arith.cmpi ne, %1, %c0_i32_0 : i32
    scf.if %2 {
      %cst_19 = arith.constant 0.000000e+00 : f32
      %50 = vector.broadcast %cst_19 : f32 to vector<20x1xf32>
      %c0_20 = arith.constant 0 : index
      %c0_21 = arith.constant 0 : index
      %51 = vector.load %arg6[%c0_20, %c0_21] : memref<20x1xf32, #tpu.memory_space<vmem>>, vector<20x1xf32>
      tpu.vector_store %arg6[%c0_20, %c0_21], %50 {strides = array<i32>} : memref<20x1xf32, #tpu.memory_space<vmem>>, vector<20x1xf32>,
    } else {
    }
    %c0 = arith.constant 0 : index
    %c0_1 = arith.constant 0 : index
    %3 = vector.load %arg2[%c0, %c0_1] : memref<20x32xf32, #tpu.memory_space<vmem>>, vector<20x32xf32>
    %c0_2 = arith.constant 0 : index
    %c0_3 = arith.constant 0 : index
    %4 = vector.load %arg3[%c0_2, %c0_3] : memref<20x32xf32, #tpu.memory_space<vmem>>, vector<20x32xf32>
    %c0_4 = arith.constant 0 : index
    %c0_5 = arith.constant 0 : index
    %5 = vector.load %arg4[%c0_4, %c0_5] : memref<20x1xi32, #tpu.memory_space<vmem>>, vector<20x1xi32>
    %6 = tpu.iota {dimensions = array<i32: 1>} : vector<20x32xi32>
    %7 = vector.broadcast %5 : vector<20x1xi32> to vector<20x32xi32>
    %8 = arith.cmpi eq, %6, %7 : vector<20x32xi32>
    %9 = arith.extui %8 : vector<20x32xi1> to vector<20x32xi32>
    %10 = arith.sitofp %9 : vector<20x32xi32> to vector<20x32xf32>
    %cst = arith.constant dense<0xFF800000> : vector<20xf32>
    %11 = vector.multi_reduction <maximumf>, %3, %cst [1] : vector<20x32xf32> to vector<20xf32>
    %12 = vector.shape_cast %11 : vector<20xf32> to vector<20x1xf32>
    %13 = vector.broadcast %12 : vector<20x1xf32> to vector<20x32xf32>
    %14 = arith.subf %3, %13 : vector<20x32xf32>
    %15 = math.exp %14 : vector<20x32xf32>
    %cst_6 = arith.constant dense<0.000000e+00> : vector<20xf32>
    %16 = vector.multi_reduction <add>, %15, %cst_6 [1] : vector<20x32xf32> to vector<20xf32>
    %17 = vector.shape_cast %16 : vector<20xf32> to vector<20x1xf32>
    %18 = math.log %17 : vector<20x1xf32>
    %19 = arith.addf %12, %18 : vector<20x1xf32>
    %20 = math.log %4 : vector<20x32xf32>
    %cst_7 = arith.constant 5.000000e-01 : f32
    %21 = vector.broadcast %cst_7 : f32 to vector<20x32xf32>
    %22 = arith.mulf %21, %10 : vector<20x32xf32>
    %cst_8 = arith.constant 5.000000e-01 : f32
    %23 = vector.broadcast %cst_8 : f32 to vector<20x32xf32>
    %24 = arith.mulf %23, %4 : vector<20x32xf32>
    %25 = arith.addf %22, %24 : vector<20x32xf32>
    %26 = arith.mulf %10, %3 : vector<20x32xf32>
    %cst_9 = arith.constant 0.000000e+00 : f32
    %27 = vector.broadcast %cst_9 : f32 to vector<20x32xf32>
    %28 = arith.subf %27, %26 : vector<20x32xf32>
    %29 = arith.mulf %25, %20 : vector<20x32xf32>
    %30 = arith.subf %28, %29 : vector<20x32xf32>
    %cst_10 = arith.constant dense<0.000000e+00> : vector<20xf32>
    %31 = vector.multi_reduction <add>, %30, %cst_10 [1] : vector<20x32xf32> to vector<20xf32>
    %32 = vector.shape_cast %31 : vector<20xf32> to vector<20x1xf32>
    %33 = arith.addf %19, %32 : vector<20x1xf32>
    %c1_i32 = arith.constant 1 : i32
    %34 = arith.muli %arg0, %c1_i32 : i32
    %35 = arith.addi %34, %arg1 : i32
    %c20_i32 = arith.constant 20 : i32
    %36 = arith.muli %35, %c20_i32 : i32
    %37 = tpu.iota {dimensions = array<i32: 0>} : vector<20x1xi32>
    %38 = vector.broadcast %36 : i32 to vector<20x1xi32>
    %39 = arith.addi %38, %37 : vector<20x1xi32>
    %c20_i32_11 = arith.constant 20 : i32
    %40 = vector.broadcast %c20_i32_11 : i32 to vector<20x1xi32>
    %41 = arith.cmpi slt, %39, %40 : vector<20x1xi32>
    %cst_12 = arith.constant 0.000000e+00 : f32
    %42 = vector.broadcast %cst_12 : f32 to vector<20x1xf32>
    %43 = arith.select %41, %33, %42 : vector<20x1xi1>, vector<20x1xf32>
    %c0_13 = arith.constant 0 : index
    %c0_14 = arith.constant 0 : index
    %44 = vector.load %arg6[%c0_13, %c0_14] : memref<20x1xf32, #tpu.memory_space<vmem>>, vector<20x1xf32>
    %45 = arith.addf %44, %43 : vector<20x1xf32>
    %c0_15 = arith.constant 0 : index
    %c0_16 = arith.constant 0 : index
    %46 = vector.load %arg6[%c0_15, %c0_16] : memref<20x1xf32, #tpu.memory_space<vmem>>, vector<20x1xf32>
    tpu.vector_store %arg6[%c0_15, %c0_16], %45 {strides = array<i32>} : memref<20x1xf32, #tpu.memory_space<vmem>>, vector<20x1xf32>,
    %c0_i32_17 = arith.constant 0 : i32
    %47 = arith.cmpi eq, %arg1, %c0_i32_17 : i32
    %48 = arith.extui %47 : i1 to i32
    %c0_i32_18 = arith.constant 0 : i32
    %49 = arith.cmpi ne, %48, %c0_i32_18 : i32
    scf.if %49 {
      %c0_19 = arith.constant 0 : index
      %c0_20 = arith.constant 0 : index
      %50 = vector.load %arg6[%c0_19, %c0_20] : memref<20x1xf32, #tpu.memory_space<vmem>>, vector<20x1xf32>
      %51 = vector.shape_cast %50 : vector<20x1xf32> to vector<1x20x1xf32>
      %cst_21 = arith.constant dense<0.000000e+00> : vector<1xf32>
      %52 = vector.multi_reduction <add>, %51, %cst_21 [1, 2] : vector<1x20x1xf32> to vector<1xf32>
      %53 = vector.shape_cast %52 : vector<1xf32> to vector<1x1x1xf32>
      %54 = vector.extract %53[0, 0, 0] : f32 from vector<1x1x1xf32>
      %55 = vector.broadcast %54 : f32 to vector<8x128xf32>
      %c0_22 = arith.constant 0 : index
      %c0_23 = arith.constant 0 : index
      %56 = vector.load %arg5[%c0_22, %c0_23] : memref<8x128xf32, #tpu.memory_space<vmem>>, vector<8x128xf32>
      tpu.vector_store %arg5[%c0_22, %c0_23], %55 {strides = array<i32>} : memref<8x128xf32, #tpu.memory_space<vmem>>, vector<8x128xf32>,
    } else {
    }
    return
  }
  func.func @transform_0(%arg0: i32, %arg1: i32) -> (i32, i32) {
    %c1_i32 = arith.constant 1 : i32
    %0 = arith.muli %arg0, %c1_i32 : i32
    %1 = arith.addi %0, %arg1 : i32
    %c0_i32 = arith.constant 0 : i32
    %2 = arith.minsi %1, %c0_i32 : i32
    %c0_i32_0 = arith.constant 0 : i32
    %c0_i32_1 = arith.constant 0 : i32
    return %2, %c0_i32_0 : i32, i32
  }
  func.func @transform_1(%arg0: i32, %arg1: i32) -> (i32, i32) {
    %c1_i32 = arith.constant 1 : i32
    %0 = arith.muli %arg0, %c1_i32 : i32
    %1 = arith.addi %0, %arg1 : i32
    %c0_i32 = arith.constant 0 : i32
    %2 = arith.minsi %1, %c0_i32 : i32
    %c0_i32_0 = arith.constant 0 : i32
    %c0_i32_1 = arith.constant 0 : i32
    return %2, %c0_i32_0 : i32, i32
  }
  func.func @transform_2(%arg0: i32, %arg1: i32) -> (i32, i32) {
    %c1_i32 = arith.constant 1 : i32
    %0 = arith.muli %arg0, %c1_i32 : i32
    %1 = arith.addi %0, %arg1 : i32
    %c0_i32 = arith.constant 0 : i32
    %2 = arith.minsi %1, %c0_i32 : i32
    %c0_i32_0 = arith.constant 0 : i32
    %c0_i32_1 = arith.constant 0 : i32
    return %2, %c0_i32_0 : i32, i32
  }
  func.func @transform_3(%arg0: i32, %arg1: i32) -> (i32, i32) {
    %c0_i32 = arith.constant 0 : i32
    %c0_i32_0 = arith.constant 0 : i32
    return %arg0, %c0_i32 : i32, i32
  }
}

</mosaic_0001>

<bundles_post_ra>
// kernel: tpu_custom_call.1
= control target key start
LH: loop header
LB: loop body
LE: loop exit
PB: predicated region body
PF: predicated region fallthrough
CT: control target
= control target key end

     0   :  { %8 = vsyncpa [#allocation4], 0  ;;  %s458_s0 = inlined_call_operand.vmem [shape: f32[20,32], index: 0, kind: input, shape index: {}]   ;;  %s459_s1 = inlined_call_operand.hbm [shape: f32[20,32], index: 1, kind: input, shape index: {}]   ;;  %s460_s2 = inlined_call_operand.vmem [shape: s32[20,1], index: 2, kind: input, shape index: {}]   ;;  %s461_s3 = inlined_call_operand.hbm [shape: f32[8,128], index: 3, kind: output, shape index: {}]  }
   0x1   :  { %9 = vsyncpa [#allocation5], 0  ;;  %s371_s12 = smov [#allocation3]  }
   0x2   :  { %s35_s13 = sshll.u32 %s371_s12, 4  ;;  %s36_s13 = int_to_ptr.vmem [resolvable:$true] %s35_s13 }
   0x3   :  { %s335_s14 = scalar_lea.vmem %s36_s13, 384  ;;  %p340_p1 = scmp.lt.s32.totalorder %s36_s13, %s36_s13 }
   0x4   :  { %p336_p0 = scmp.ne.s32.totalorder %s36_s13, %s335_s14  ;;  %p341_p2 = scmp.lt.s32.totalorder %s335_s14, %s335_s14 }
   0x6   :  { %p342_p3 = por %p341_p2, %p340_p1 }
   0x8   :  { %p343_p4 = pnand %p342_p3, %p336_p0 }
   0xa   :  { %346 = shalt.err (!%p343_p4)
}
   0xb   :  { %s372_s15 = smov 128   ;;  %s373_s16 = smov 8  }
   0xc   :  { %41 = dma.hbm_to_vmem [thread:$0]  %s459_s1, 384, %s36_s13, [#allocation4], %s372_s15, %s372_s15, %s373_s16  }
   0xd   :  { %367 = dma.done.wait [#allocation4], 384  }
   0xe   :  { %368 = vsyncadd [#allocation4], 4294966912  ;;  %v374_v0 = vmov 0   ;;  %vm141_vm0 = vcmask 261120   ;;  %vm148_vm1 = vcmask 257024   ;;  %v112_v1 = vld [vmem:[%s458_s0] sm:$0xff]  ;;  %v121_v11 = vlaneseq }
   0xf   :  { %307 = vset.pattern.permute.xlu1 %v374_v0  ;;  %308 = vset.pattern.permute.xlu0 %v374_v0  ;;  %v406_v2 = vld [vmem:[%s458_s0 + $0x10] sm:$0xf]  ;;  %v113_v3 = vld [vmem:[%s458_s0 + $0x8] sm:$0xff]  ;;  %v142_v4 = vsel %vm141_vm0, %v112_v1, -inf  ;;  %v118_v7 = vld [vmem:[%s460_s2] sm:$0xff]  ;;  %v375_v24 = vmov 0.0  }
  0x10   :  { %v149_v5 = vsel %vm148_vm1, %v406_v2, -inf  ;;  %143 = vmax.xlane.f32.xlu0 %v142_v4  ;;  %v145_v6 = vsel %vm141_vm0, %v113_v3, -inf  ;;  %v120_v8 = vld [vmem:[%s460_s2 + $0x10] sm:$0xf]  ;;  %v119_v9 = vld [vmem:[%s460_s2 + $0x8] sm:$0xff]  ;;  %v115_v10 = vld [vmem:[#allocation3] sm:$0xff] }
  0x11   :  { %150 = vmax.xlane.f32.xlu1 %v149_v5  ;;  %309 = vlog2.f32 %v115_v10  ;;  %v116_v12 = vld [vmem:[#allocation3 + $0x8] sm:$0xff]  ;;  %v122_v17 = vand.u32 127, %v121_v11  ;;  %v117_v22 = vld [vmem:[#allocation3 + $0x10] sm:$0xf]  ;;  %v188_v28 = vmul.f32 0.5, %v115_v10  ;;  %vm107_vm5 = vcmask 7168  }
  0x12   :  { %311 = vlog2.f32 %v116_v12  ;;  %v189_v31 = vmul.f32 0.5, %v116_v12  ;;  %v190_v48 = vmul.f32 0.5, %v117_v22  ;;  %108 = vst.msk [vmem:[#allocation2] sm:$0xff] %vm107_vm5, %v375_v24  ;;  %109 = vst.msk [vmem:[#allocation2 + $0x8] sm:$0xff] %vm107_vm5, %v375_v24  ;;  %vm110_vm6 = vcmask 3072   ;;  %s376_s2 = smov [#allocation6]  }
  0x13   :  { %111 = vst.msk [vmem:[#allocation2 + $0x10] sm:$0xf] %vm110_vm6, %v375_v24  ;;  %s273_s29 = sshll.u32 %s376_s2, 4  ;;  %s274_s29 = int_to_ptr.vmem [resolvable:$true] %s273_s29 }
  0x14   :  { %146 = vmax.xlane.f32.xlu0 %v145_v6  ;;  %s347_s4 = scalar_lea.vmem %s274_s29, 128  ;;  %p352_p6 = scmp.lt.s32.totalorder %s274_s29, %s274_s29 }
  0x15   :  { %p348_p5 = scmp.ne.s32.totalorder %s274_s29, %s347_s4  ;;  %p353_p7 = scmp.lt.s32.totalorder %s347_s4, %s347_s4 }
  0x17   :  { %p354_p8 = por %p353_p7, %p352_p6 }
  0x19   :  { %p355_p9 = pnand %p354_p8, %p348_p5 }
  0x1e   :  { %v310_v27 = vpop.eup %309 }
  0x1f   :  { %v180_v33 = vmul.f32 0.6931472, %v310_v27  ;;  %v312_v34 = vpop.eup %311 }
  0x20   :  { %v182_v40 = vmul.f32 0.6931472, %v312_v34 }
  0x22   :  { %124 = vperm.xlu1 %307, %v118_v7  }
  0x26   :  { %130 = vperm.xlu1 %307, %v120_v8   ;;  %v221_v8 = vshrl.u32 %v121_v11, 7  ;;  %v235_v11 = vld [vmem:[#allocation2 + $0x8] sm:$0xff] }
  0x2a   :  { %127 = vperm.xlu0 %308, %v119_v9  }
  0x99   :  { %v424_v13 = vpop.xlane.xlu0 %143 }
  0x9a   :  { %v426_v14 = vpop.xlane.xlu1 %150  ;;  %v152_v15 = vsub.f32 %v112_v1, %v424_v13 }
  0x9b   :  { %v154_v16 = vsub.f32 %v406_v2, %v426_v14 }
  0x9c   :  { %v155_v18 = vmul.f32 1.442695, %v152_v15 }
  0x9d   :  { %v159_v19 = vmul.f32 1.442695, %v154_v16  ;;  %v432_v20 = vpop.xlane.xlu0 %146  ;;  %v234_v16 = vld [vmem:[#allocation2] sm:$0xff] }
  0x9e   :  { %v125_v21 = vpop.permute.xlu1 %124  ;;  %313 = vpow2.f32 %v155_v18  ;;  %v153_v23 = vsub.f32 %v113_v3, %v432_v20 }
  0x9f   :  { %vm132_vm2 = vcmp.eq.s32.totalorder %v122_v17, %v125_v21  ;;  %315 = vpow2.f32 %v159_v19 }
  0xa0   :  { %v296_v25 = vsel %vm132_vm2, 1.0, %v375_v24  ;;  %v157_v26 = vmul.f32 1.442695, %v153_v23  ;;  %317 = vlog2.f32 %v117_v22 }
  0xa1   :  { %v185_v29 = vmul.f32 0.5, %v296_v25  ;;  %v194_v36 = vmul.f32 %v296_v25, %v112_v1 }
  0xa2   :  { %319 = vpow2.f32 %v157_v26  ;;  %v131_v30 = vpop.permute.xlu1 %130 }
  0xa3   :  { %v191_v35 = vadd.f32 %v188_v28, %v185_v29  ;;  %vm134_vm4 = vcmp.eq.s32.totalorder %v122_v17, %v131_v30  ;;  %v197_v41 = vsub.f32 0.0, %v194_v36  ;;  %v236_v28 = vld [vmem:[#allocation2 + $0x10] sm:$0xf] }
  0xa4   :  { %v298_v39 = vsel %vm134_vm4, 1.0, %v375_v24 }
  0xa5   :  { %v128_v32 = vpop.permute.xlu0 %127  ;;  %v200_v44 = vmul.f32 %v191_v35, %v180_v33  ;;  %v187_v49 = vmul.f32 0.5, %v298_v39  ;;  %v196_v57 = vmul.f32 %v298_v39, %v406_v2 }
  0xa6   :  { %vm133_vm3 = vcmp.eq.s32.totalorder %v122_v17, %v128_v32  ;;  %v223_v17 = vadd.s32 16, %v221_v8 }
  0xa7   :  { %v297_v37 = vsel %vm133_vm3, 1.0, %v375_v24  ;;  %v203_v53 = vsub.f32 %v197_v41, %v200_v44  ;;  %v193_v56 = vadd.f32 %v190_v48, %v187_v49  ;;  %v199_v62 = vsub.f32 0.0, %v196_v57 }
  0xa8   :  { %v186_v38 = vmul.f32 0.5, %v297_v37  ;;  %v195_v43 = vmul.f32 %v297_v37, %v113_v3  ;;  %vm230_vm7 = vcmp.lt.s32.totalorder %v223_v17, 20 }
  0xa9   :  { %v206_v60 = vsel %vm141_vm0, %v203_v53, 0.0 }
  0xaa   :  { %v192_v42 = vadd.f32 %v189_v31, %v186_v38  ;;  %v198_v51 = vsub.f32 0.0, %v195_v43 }
  0xab   :  { %v314_v45 = vpop.eup %313 }
  0xac   :  { %v316_v46 = vpop.eup %315  ;;  %v161_v47 = vsel %vm141_vm0, %v314_v45, 0.0  ;;  %v201_v54 = vmul.f32 %v192_v42, %v182_v40 }
  0xad   :  { %v318_v50 = vpop.eup %317  ;;  %162 = vadd.xlane.f32.xlu1 %v161_v47  ;;  %v167_v52 = vsel %vm148_vm1, %v316_v46, 0.0 }
  0xae   :  { %v184_v59 = vmul.f32 0.6931472, %v318_v50  ;;  %v204_v61 = vsub.f32 %v198_v51, %v201_v54 }
  0xaf   :  { %v320_v55 = vpop.eup %319 }
  0xb0   :  { %v164_v58 = vsel %vm141_vm0, %v320_v55, 0.0  ;;  %v202_v63 = vmul.f32 %v193_v56, %v184_v59  ;;  %v209_v0 = vsel %vm141_vm0, %v204_v61, 0.0 }
  0xb1   :  { %168 = vadd.xlane.f32.xlu1 %v167_v52  ;;  %165 = vadd.xlane.f32.xlu0 %v164_v58 }
  0xb2   :  { %v205_v1 = vsub.f32 %v199_v62, %v202_v63 }
  0xb4   :  { %v212_v3 = vsel %vm148_vm1, %v205_v1, 0.0 }
  0xb5   :  { %207 = vadd.xlane.f32.xlu1 %v206_v60 }
  0xb9   :  { %210 = vadd.xlane.f32.xlu1 %v209_v0 }
  0xbd   :  { %213 = vadd.xlane.f32.xlu1 %v212_v3 }
 0x136   :  { %v163_v2 = vpop.xlane.xlu1 %162 }
 0x137   :  { %321 = vlog2.f32 %v163_v2 }
 0x13a   :  { %v169_v4 = vpop.xlane.xlu1 %168  ;;  %v166_v5 = vpop.xlane.xlu0 %165 }
 0x13b   :  { %323 = vlog2.f32 %v169_v4 }
 0x13c   :  { %325 = vlog2.f32 %v166_v5 }
 0x13e   :  { %v208_v6 = vpop.xlane.xlu1 %207 }
 0x142   :  { %v211_v10 = vpop.xlane.xlu1 %210 }
 0x144   :  { %v322_v7 = vpop.eup %321 }
 0x145   :  { %v171_v9 = vmul.f32 0.6931472, %v322_v7 }
 0x146   :  { %v214_v26 = vpop.xlane.xlu1 %213 }
 0x147   :  { %v176_v12 = vadd.f32 %v171_v9, %v424_v13 }
 0x148   :  { %v324_v15 = vpop.eup %323 }
 0x149   :  { %v326_v18 = vpop.eup %325  ;;  %v175_v19 = vmul.f32 0.6931472, %v324_v15  ;;  %v215_v21 = vadd.f32 %v208_v6, %v176_v12 }
 0x14a   :  { %v173_v22 = vmul.f32 0.6931472, %v326_v18 }
 0x14b   :  { %v237_v23 = vadd.f32 %v234_v16, %v215_v21  ;;  %v178_v24 = vadd.f32 %v175_v19, %v426_v14 }
 0x14c   :  { %v177_v25 = vadd.f32 %v173_v22, %v432_v20 }
 0x14d   :  { %241 = vst.msk [vmem:[#allocation2] sm:$0xff] %vm107_vm5, %v237_v23  ;;  %v217_v27 = vadd.f32 %v214_v26, %v178_v24 }
 0x14e   :  { %v216_v13 = vadd.f32 %v211_v10, %v177_v25 }
 0x14f   :  { %v233_v29 = vsel %vm230_vm7, %v217_v27, 0.0 }
 0x150   :  { %v238_v30 = vadd.f32 %v235_v11, %v216_v13  ;;  %v239_v31 = vadd.f32 %v236_v28, %v233_v29 }
 0x152   :  { %242 = vst.msk [vmem:[#allocation2 + $0x8] sm:$0xff] %vm107_vm5, %v238_v30 }
 0x153   :  { %244 = vst.msk [vmem:[#allocation2 + $0x10] sm:$0xf] %vm110_vm6, %v239_v31 }
 0x154   :  { %v248_v32 = vld [vmem:[#allocation2] sm:$0xff] }
 0x155   :  { %v251_v20 = vsel %vm107_vm5, %v248_v32, 0.0 }
 0x159   :  { %v249_v33 = vld [vmem:[#allocation2 + $0x8] sm:$0xff] }
 0x15a   :  { %v250_v14 = vld [vmem:[#allocation2 + $0x10] sm:$0xf]  ;;  %v252_v34 = vsel %vm107_vm5, %v249_v33, 0.0 }
 0x15b   :  { %v254_v35 = vsel %vm110_vm6, %v250_v14, 0.0  ;;  %v253_v36 = vadd.f32 %v252_v34, %v251_v20 }
 0x15d   :  { %v255_v37 = vadd.f32 %v254_v35, %v253_v36 }
 0x15f   :  { %256 = vadd.xlane.f32.xlu1 %v255_v37 }
 0x1e8   :  { %v257_v38 = vpop.xlane.xlu1 %256 }
 0x1e9   :  { %v258_v39 = vrot.slane %v257_v38, 4 }
 0x1eb   :  { %v259_v40 = vadd.f32 %v258_v39, %v257_v38 }
 0x1ed   :  { %v260_v41 = vrot.slane %v259_v40, 2 }
 0x1ef   :  { %v261_v42 = vadd.f32 %v260_v41, %v259_v40 }
 0x1f1   :  { %v262_v43 = vrot.slane %v261_v42, 1 }
 0x1f3   :  { %v263_v44 = vadd.f32 %v262_v43, %v261_v42 }
 0x1f5   :  { %299 = vpush %v263_v44 }
 0x226   :  { %s300_s30 = spop %299 }
 0x227   :  { %v265_v45 = vstv %s300_s30 }
 0x228   :  { %266 = vst [vmem:[#allocation6] sm:$0xff] %v265_v45 }
 0x229   :  { %358 = shalt.err (!%p355_p9)
}
 0x22a   :  { %276 = dma.vmem_to_hbm [thread:$0]  %s274_s29, 128, %s461_s3, [#allocation5]  }
 0x22b   :  { %369 = dma.done.wait [#allocation5], 128  }
 0x22c   :  { %370 = vsyncadd [#allocation5], 4294967168 }
 0x22d   :  { %280 = vsyncpa [#allocation4], 1 }
 0x22e   :  { %281 = vsyncpa [#allocation5], 1 }

</bundles_post_ra>
